<compile_context>
chip_gen: v6e
topology: v6e:2x2x1
jax: 0.10.0
libtpu: 0.0.40
codegen_flags: <defaults>
</compile_context>

<pallas_src>
import functools

import jax
import jax.numpy as jnp
from jax.experimental import pallas as pl
from jax.experimental.pallas import tpu as pltpu

_HEAD_N = 128   # lane-dense packed head width: [disc(2) | cls(nc) | zero pad]


def _softplus(v):
    # numerically stable softplus (transcendental work lands on the EUP slot)
    return jnp.maximum(v, 0.0) + jnp.log1p(jnp.exp(-jnp.abs(v)))


# --------------------------------------------------------------------------
# Fused kernel
# --------------------------------------------------------------------------
def _dann_fused_kernel(x_ref, tconv_ref, bconv_ref, wfeat_ref, bfeat_ref,
                       whead_ref, bhead_ref, y_ref,
                       logits_ref, partial_ref,
                       *, h, w, num_classes):
    tile_b = x_ref.shape[0]
    wp_cin = x_ref.shape[2]          # (W+2) * Cin  -- lane-dense input minor dim
    w_cout = tconv_ref.shape[2]      # W * Cout     -- lane-dense conv minor dim
    cout = w_cout // w

    # ---- conv3x3 (stride 1, pad 1) + ReLU: 3 fused im2col matmuls ----------
    # For each kernel row dy, the block-Toeplitz weight contracts the dx and
    # Cin axes at once (K = Wp*Cin, N = W*Cout). LHS slices are contiguous
    # sublane ranges of the x block -> no lane relayout.
    acc = jnp.zeros((tile_b * h, w_cout), jnp.float32)
    for dy in range(3):
        lhs = x_ref[:, dy:dy + h, :].reshape(tile_b * h, wp_cin)      # bf16
        acc = acc + jnp.dot(lhs, tconv_ref[dy],
                            preferred_element_type=jnp.float32)
    conv = jnp.maximum(acc + bconv_ref[...], 0.0)     # (tile_b*h, W*Cout) f32

    # ---- global average pool: reduce over H (sublanes), then over W --------
    col = jnp.sum(conv.reshape(tile_b, h, w_cout), axis=1)      # (tile_b, W*Cout)
    pooled = jnp.sum(col.reshape(tile_b, w, cout), axis=1) * (1.0 / (h * w))

    # ---- featurizer linear -> z --------------------------------------------
    z = (jnp.dot(pooled.astype(wfeat_ref.dtype), wfeat_ref[...],
                 preferred_element_type=jnp.float32) + bfeat_ref[...])

    # ---- packed head: [discriminator | classifier | zero-pad] --------------
    logits = (jnp.dot(z.astype(whead_ref.dtype), whead_ref[...],
                      preferred_element_type=jnp.float32) + bhead_ref[...])
    logits_ref[...] = logits.reshape(logits_ref.shape)    # lane-dense store

    # ---- losses (all f32) ---------------------------------------------------
    yv = y_ref[0]                                           # (tile_b, nc+1)
    lab_i = jnp.clip(yv[:, -1:].astype(jnp.int32), 0, 1)    # domain label, clamped
    lab_f = lab_i.astype(jnp.float32)
    targets = yv[:, :num_classes]

    # discriminator: 2-class softmax CE == softplus of the signed logit diff
    diff = logits[:, 1:2] - logits[:, 0:1]
    ce = _softplus((1.0 - 2.0 * lab_f) * diff)              # (tile_b, 1)

    # classifier: per-element BCE-with-logits, averaged over classes, masked
    cl = logits[:, 2:2 + num_classes]
    bce = jnp.maximum(cl, 0.0) - cl * targets + jnp.log1p(jnp.exp(-jnp.abs(cl)))
    per_sample = jnp.mean(bce, axis=-1, keepdims=True)       # (tile_b, 1)
    mask = (lab_i == 0).astype(jnp.float32)                  # source-domain mask

    # per-tile partial sums, written lane-dense; final reduce in the wrapper
    ce_sum = jnp.sum(ce)
    bce_sum = jnp.sum(per_sample * mask)
    mask_sum = jnp.sum(mask)
    lane = jax.lax.broadcasted_iota(jnp.int32, partial_ref.shape, 2)
    partial_ref[...] = (jnp.where(lane == 0, ce_sum, 0.0)
                        + jnp.where(lane == 1, bce_sum, 0.0)
                        + jnp.where(lane == 2, mask_sum, 0.0))


# --------------------------------------------------------------------------
# Wrapper
# --------------------------------------------------------------------------
def _conv_toeplitz(w_conv_oihw, w, cin, cout):
    """(Cout,Cin,3,3) PyTorch conv weight -> (3, (W+2)*Cin, W*Cout) block-Toeplitz.

    T[dy, wp*Cin + c, j*Cout + o] = W[o, c, dy, wp - j]  when 0 <= wp - j <= 2.
    """
    wp = w + 2
    wk = jnp.transpose(w_conv_oihw, (2, 3, 1, 0))            # (dy, dx, cin, cout)
    wp_idx = jnp.arange(wp)
    j_idx = jnp.arange(w)
    dx = wp_idx[:, None] - j_idx[None, :]                    # (wp, w)
    valid = (dx >= 0) & (dx <= 2)
    g = wk[:, jnp.clip(dx, 0, 2)]                            # (3, wp, w, cin, cout)
    g = jnp.where(valid[None, :, :, None, None], g, 0.0)
    return jnp.transpose(g, (0, 1, 3, 2, 4)).reshape(3, wp * cin, w * cout)


def dann_forward(params, x, y, *, tile_b=None):
    """Eval-mode DANN.forward with infer_classifier=True (BCE-with-logits loss fcn)."""
    b, cin, h, w = x.shape
    cout, feat = params["w_feat"].shape
    nc = params["w_cls"].shape[1]
    assert 2 + nc <= _HEAD_N

    if tile_b is None:
        # aim for >= 4 grid steps so BlockSpec double-buffering overlaps the x
        # DMA with compute; fall back to whatever divides the (toy) batch.
        tile_b = b
        for cand in (b // 8, b // 4, b // 2, b):
            if cand >= 1 and b % cand == 0:
                tile_b = cand
                break
    assert b % tile_b == 0
    n_bt = b // tile_b
    hp, wp = h + 2, w + 2

    # ---- one-time layout plumbing (wrapper side) ---------------------------
    # NCHW -> padded NHWC -> merge (W, C) so the lane axis is Wp*Cin wide.
    x_m = jnp.pad(jnp.transpose(x, (0, 2, 3, 1)),
                  ((0, 0), (1, 1), (1, 1), (0, 0))).reshape(b, hp, wp * cin)
    x_m = x_m.astype(jnp.bfloat16)

    t_conv = _conv_toeplitz(params["w_conv"], w, cin, cout).astype(jnp.bfloat16)
    b_conv_t = jnp.tile(params["b_conv"].reshape(1, cout), (1, w)).astype(jnp.float32)
    w_feat = params["w_feat"].astype(jnp.bfloat16)
    b_feat = params["b_feat"].reshape(1, feat).astype(jnp.float32)

    w_head = jnp.concatenate([params["w_disc"], params["w_cls"]], axis=1)
    w_head = jnp.pad(w_head, ((0, 0), (0, _HEAD_N - 2 - nc))).astype(jnp.bfloat16)
    b_head = jnp.concatenate([params["b_disc"], params["b_cls"]], axis=0).reshape(1, -1)
    b_head = jnp.pad(b_head, ((0, 0), (0, _HEAD_N - 2 - nc))).astype(jnp.float32)

    y_t = y.astype(jnp.float32).reshape(n_bt, tile_b, nc + 1)

    kernel = functools.partial(_dann_fused_kernel, h=h, w=w, num_classes=nc)

    logits_out, partials = pl.pallas_call(
        kernel,
        out_shape=(
            jax.ShapeDtypeStruct((n_bt, tile_b, _HEAD_N), jnp.float32),  # padded logits
            jax.ShapeDtypeStruct((n_bt, 1, 128), jnp.float32),           # loss partials
        ),
        grid_spec=pltpu.PrefetchScalarGridSpec(
            num_scalar_prefetch=0,
            grid=(n_bt,),
            in_specs=[
                pl.BlockSpec((tile_b, hp, wp * cin), lambda i: (i, 0, 0)),
                # constant-index weights / biases (block == full array; tiny)
                pl.BlockSpec((3, wp * cin, w * cout), lambda i: (0, 0, 0)),
                pl.BlockSpec((1, w * cout), lambda i: (0, 0)),
                pl.BlockSpec((cout, feat), lambda i: (0, 0)),
                pl.BlockSpec((1, feat), lambda i: (0, 0)),
                pl.BlockSpec((feat, _HEAD_N), lambda i: (0, 0)),
                pl.BlockSpec((1, _HEAD_N), lambda i: (0, 0)),
                pl.BlockSpec((1, tile_b, nc + 1), lambda i: (i, 0, 0)),
            ],
            out_specs=(
                pl.BlockSpec((1, tile_b, _HEAD_N), lambda i: (i, 0, 0)),
                pl.BlockSpec((1, 1, 128), lambda i: (i, 0, 0)),
            ),
        ),
        compiler_params=pltpu.CompilerParams(
            # per-tile partial-sum outputs -> the batch axis is fully parallel
            # (v7x megacore shards it; no effect on single-TC v5e/v6e).
            dimension_semantics=("parallel",),
            # ample for these toy sizes; re-derive per generation when scaling
            # tile_b (v6e: up to ~64-96 MiB; v7x: keep <= ~48 MiB of 64 MiB).
            vmem_limit_bytes=32 * 1024 * 1024,
        ),
    )(x_m, t_conv, b_conv_t, w_feat, b_feat, w_head, b_head, y_t)

    # final (tiny) reductions outside the kernel
    p = jnp.sum(partials[:, 0, :], axis=0)
    disc_loss = p[0] / b
    # NOTE: divides by max(n_source, 1); an all-target-domain batch returns 0
    # where PyTorch would produce NaN.
    classifier_loss = p[1] / jnp.maximum(p[2], 1.0)
    y_pred = logits_out.reshape(b, _HEAD_N)[:, 2:2 + nc]

    loss_dict = {"disc_loss": disc_loss, "classifier_loss": classifier_loss}
    # TODO(synk): training-mode grad_penalty (torch.autograd.grad through the
    # discriminator), conditional=True (class_embeddings) and class_balance
    # branches are not kerneled (eval-mode defaults only).
    return loss_dict, y_pred


# --------------------------------------------------------------------------
# Pure-JAX reference (for correctness checking)
# --------------------------------------------------------------------------
def dann_reference(params, x, y):
    nc = params["w_cls"].shape[1]
    conv = jax.lax.conv_general_dilated(
        x, params["w_conv"], window_strides=(1, 1), padding="SAME",
        dimension_numbers=("NCHW", "OIHW", "NCHW"))
    conv = jnp.maximum(conv + params["b_conv"].reshape(1, -1, 1, 1), 0.0)
    pooled = jnp.mean(conv, axis=(2, 3))
    z = pooled @ params["w_feat"] + params["b_feat"]
    dl = z @ params["w_disc"] + params["b_disc"]
    cl = z @ params["w_cls"] + params["b_cls"]
    lab = jnp.clip(y[:, -1].astype(jnp.int32), 0, 1)
    targets = y[:, :nc]
    logp = jax.nn.log_softmax(dl, axis=-1)
    ce = -jnp.take_along_axis(logp, lab[:, None], axis=1)[:, 0]
    disc_loss = jnp.mean(ce)
    bce = jnp.maximum(cl, 0.0) - cl * targets + jnp.log1p(jnp.exp(-jnp.abs(cl)))
    per_sample = jnp.mean(bce, axis=-1)
    mask = (lab == 0).astype(jnp.float32)
    classifier_loss = jnp.sum(per_sample * mask) / jnp.maximum(jnp.sum(mask), 1.0)
    return {"disc_loss": disc_loss, "classifier_loss": classifier_loss}, cl


# --------------------------------------------------------------------------
# Params (PyTorch layouts; kernel-friendly transforms happen in the wrapper)
# --------------------------------------------------------------------------
def init_params(key, cin=4, cout=8, feat=32, num_classes=3):
    ks = jax.random.split(key, 8)
    s = 0.1
    return {
        "w_conv": s * jax.random.normal(ks[0], (cout, cin, 3, 3), jnp.float32),
        "b_conv": s * jax.random.normal(ks[1], (cout,), jnp.float32),
        "w_feat": s * jax.random.normal(ks[2], (cout, feat), jnp.float32),
        "b_feat": s * jax.random.normal(ks[3], (feat,), jnp.float32),
        "w_disc": s * jax.random.normal(ks[4], (feat, 2), jnp.float32),
        "b_disc": s * jax.random.normal(ks[5], (2,), jnp.float32),
        "w_cls": s * jax.random.normal(ks[6], (feat, num_classes), jnp.float32),
        "b_cls": s * jax.random.normal(ks[7], (num_classes,), jnp.float32),
    }


if __name__ == "__main__":
    key = jax.random.PRNGKey(0)
    k_x, k_y, k_p = jax.random.split(key, 3)

    B, CIN, H, W = 2, 4, 16, 16
    FEAT, COUT, NUM_CLASSES = 32, 8, 3

    x = jax.random.normal(k_x, (B, CIN, H, W), jnp.float32)
    # y: (B, num_classes + 1); first num_classes cols = multi-hot targets,
    # last column = domain label in {0, 1}.
    targets = (jax.random.uniform(k_y, (B, NUM_CLASSES)) > 0.5).astype(jnp.float32)
    domain = jnp.array([[0.0], [1.0]], jnp.float32)
    y = jnp.concatenate([targets, domain], axis=1)

    params = init_params(k_p, cin=CIN, cout=COUT, feat=FEAT, num_classes=NUM_CLASSES)

    loss_dict, y_pred = dann_forward(params, x, y)
    jax.block_until_ready((loss_dict, y_pred))

    # correctness check vs. pure-JAX reference (bf16 matmuls -> loose tolerance)
    ref_losses, ref_pred = dann_reference(params, x, y)
    assert jnp.allclose(y_pred, ref_pred, atol=2e-2), (y_pred, ref_pred)
    assert jnp.allclose(loss_dict["disc_loss"], ref_losses["disc_loss"], atol=2e-2)
    assert jnp.allclose(loss_dict["classifier_loss"],
                        ref_losses["classifier_loss"], atol=2e-2)

    print("KERNEL_OK")
</pallas_src>

<mosaic_0001>
module attributes {stable_mosaic.version = 11 : i64} {
  func.func @_dann_fused_kernel(%arg0: i32, %arg1: memref<1x18x72xbf16, #tpu.memory_space<vmem>>, %arg2: memref<3x72x128xbf16, #tpu.memory_space<vmem>>, %arg3: memref<1x128xf32, #tpu.memory_space<vmem>>, %arg4: memref<8x32xbf16, #tpu.memory_space<vmem>>, %arg5: memref<1x32xf32, #tpu.memory_space<vmem>>, %arg6: memref<32x128xbf16, #tpu.memory_space<vmem>>, %arg7: memref<1x128xf32, #tpu.memory_space<vmem>>, %arg8: memref<1x1x4xf32, #tpu.memory_space<vmem>>, %arg9: memref<1x1x128xf32, #tpu.memory_space<vmem>>, %arg10: memref<1x1x128xf32, #tpu.memory_space<vmem>>) attributes {dimension_semantics = [#tpu.dimension_semantics<parallel>], iteration_bounds = array<i64: 2>, scalar_prefetch = 0 : i64, scratch_operands = 0 : i64, tpu.core_type = #tpu.core_type<tc>, window_params = [{transform_indices = @transform_0, window_bounds = array<i64: 1, 18, 72>}, {pipeline_mode = #tpu.pipeline_mode<synchronous>, transform_indices = @transform_1, window_bounds = array<i64: 3, 72, 128>}, {pipeline_mode = #tpu.pipeline_mode<synchronous>, transform_indices = @transform_2, window_bounds = array<i64: 1, 128>}, {pipeline_mode = #tpu.pipeline_mode<synchronous>, transform_indices = @transform_3, window_bounds = array<i64: 8, 32>}, {pipeline_mode = #tpu.pipeline_mode<synchronous>, transform_indices = @transform_4, window_bounds = array<i64: 1, 32>}, {pipeline_mode = #tpu.pipeline_mode<synchronous>, transform_indices = @transform_5, window_bounds = array<i64: 32, 128>}, {pipeline_mode = #tpu.pipeline_mode<synchronous>, transform_indices = @transform_6, window_bounds = array<i64: 1, 128>}, {transform_indices = @transform_7, window_bounds = array<i64: 1, 1, 4>}, {transform_indices = @transform_8, window_bounds = array<i64: 1, 1, 128>}, {transform_indices = @transform_9, window_bounds = array<i64: 1, 1, 128>}]} {
    %cst = arith.constant 0.000000e+00 : f32
    %0 = vector.broadcast %cst : f32 to vector<16x128xf32>
    %c0 = arith.constant 0 : index
    %c0_0 = arith.constant 0 : index
    %c0_1 = arith.constant 0 : index
    %1 = vector.load %arg1[%c0, %c0_0, %c0_1] : memref<1x18x72xbf16, #tpu.memory_space<vmem>>, vector<1x16x72xbf16>
    %2 = vector.shape_cast %1 : vector<1x16x72xbf16> to vector<16x72xbf16>
    %c0_2 = arith.constant 0 : index
    %c0_3 = arith.constant 0 : index
    %c0_4 = arith.constant 0 : index
    %3 = vector.load %arg2[%c0_2, %c0_3, %c0_4] : memref<3x72x128xbf16, #tpu.memory_space<vmem>>, vector<1x72x128xbf16>
    %4 = vector.shape_cast %3 : vector<1x72x128xbf16> to vector<72x128xbf16>
    %cst_5 = arith.constant dense<0.000000e+00> : vector<16x128xf32>
    %5 = tpu.matmul %2, %4, %cst_5 {dimension_numbers = #tpu.dot_dimension_numbers<[1], [0], [0], [1], [0, 0, 1, 1], [], []>} : vector<16x72xbf16>, vector<72x128xbf16>, vector<16x128xf32> -> vector<16x128xf32>
    %6 = arith.addf %0, %5 : vector<16x128xf32>
    %c0_6 = arith.constant 0 : index
    %c1 = arith.constant 1 : index
    %c0_7 = arith.constant 0 : index
    %7 = vector.load %arg1[%c0_6, %c1, %c0_7] : memref<1x18x72xbf16, #tpu.memory_space<vmem>>, vector<1x16x72xbf16>
    %8 = vector.shape_cast %7 : vector<1x16x72xbf16> to vector<16x72xbf16>
    %c1_8 = arith.constant 1 : index
    %c0_9 = arith.constant 0 : index
    %c0_10 = arith.constant 0 : index
    %9 = vector.load %arg2[%c1_8, %c0_9, %c0_10] : memref<3x72x128xbf16, #tpu.memory_space<vmem>>, vector<1x72x128xbf16>
    %10 = vector.shape_cast %9 : vector<1x72x128xbf16> to vector<72x128xbf16>
    %cst_11 = arith.constant dense<0.000000e+00> : vector<16x128xf32>
    %11 = tpu.matmul %8, %10, %cst_11 {dimension_numbers = #tpu.dot_dimension_numbers<[1], [0], [0], [1], [0, 0, 1, 1], [], []>} : vector<16x72xbf16>, vector<72x128xbf16>, vector<16x128xf32> -> vector<16x128xf32>
    %12 = arith.addf %6, %11 : vector<16x128xf32>
    %c0_12 = arith.constant 0 : index
    %c2 = arith.constant 2 : index
    %c0_13 = arith.constant 0 : index
    %13 = vector.load %arg1[%c0_12, %c2, %c0_13] : memref<1x18x72xbf16, #tpu.memory_space<vmem>>, vector<1x16x72xbf16>
    %14 = vector.shape_cast %13 : vector<1x16x72xbf16> to vector<16x72xbf16>
    %c2_14 = arith.constant 2 : index
    %c0_15 = arith.constant 0 : index
    %c0_16 = arith.constant 0 : index
    %15 = vector.load %arg2[%c2_14, %c0_15, %c0_16] : memref<3x72x128xbf16, #tpu.memory_space<vmem>>, vector<1x72x128xbf16>
    %16 = vector.shape_cast %15 : vector<1x72x128xbf16> to vector<72x128xbf16>
    %cst_17 = arith.constant dense<0.000000e+00> : vector<16x128xf32>
    %17 = tpu.matmul %14, %16, %cst_17 {dimension_numbers = #tpu.dot_dimension_numbers<[1], [0], [0], [1], [0, 0, 1, 1], [], []>} : vector<16x72xbf16>, vector<72x128xbf16>, vector<16x128xf32> -> vector<16x128xf32>
    %18 = arith.addf %12, %17 : vector<16x128xf32>
    %c0_18 = arith.constant 0 : index
    %c0_19 = arith.constant 0 : index
    %19 = vector.load %arg3[%c0_18, %c0_19] : memref<1x128xf32, #tpu.memory_space<vmem>>, vector<1x128xf32>
    %20 = vector.broadcast %19 : vector<1x128xf32> to vector<16x128xf32>
    %21 = arith.addf %18, %20 : vector<16x128xf32>
    %cst_20 = arith.constant 0.000000e+00 : f32
    %22 = vector.broadcast %cst_20 : f32 to vector<16x128xf32>
    %23 = arith.maximumf %21, %22 : vector<16x128xf32>
    %24 = vector.shape_cast %23 : vector<16x128xf32> to vector<1x16x128xf32>
    %cst_21 = arith.constant dense<0.000000e+00> : vector<1x128xf32>
    %25 = vector.multi_reduction <add>, %24, %cst_21 [1] : vector<1x16x128xf32> to vector<1x128xf32>
    %26 = vector.shape_cast %25 : vector<1x128xf32> to vector<1x16x8xf32>
    %cst_22 = arith.constant dense<0.000000e+00> : vector<1x8xf32>
    %27 = vector.multi_reduction <add>, %26, %cst_22 [1] : vector<1x16x8xf32> to vector<1x8xf32>
    %cst_23 = arith.constant 3.906250e-03 : f32
    %28 = vector.broadcast %cst_23 : f32 to vector<1x8xf32>
    %29 = arith.mulf %27, %28 : vector<1x8xf32>
    %30 = arith.truncf %29 : vector<1x8xf32> to vector<1x8xbf16>
    %c0_24 = arith.constant 0 : index
    %c0_25 = arith.constant 0 : index
    %31 = vector.load %arg4[%c0_24, %c0_25] : memref<8x32xbf16, #tpu.memory_space<vmem>>, vector<8x32xbf16>
    %cst_26 = arith.constant dense<0.000000e+00> : vector<1x32xf32>
    %32 = tpu.matmul %30, %31, %cst_26 {dimension_numbers = #tpu.dot_dimension_numbers<[1], [0], [0], [1], [0, 0, 1, 1], [], []>} : vector<1x8xbf16>, vector<8x32xbf16>, vector<1x32xf32> -> vector<1x32xf32>
    %c0_27 = arith.constant 0 : index
    %c0_28 = arith.constant 0 : index
    %33 = vector.load %arg5[%c0_27, %c0_28] : memref<1x32xf32, #tpu.memory_space<vmem>>, vector<1x32xf32>
    %34 = arith.addf %32, %33 : vector<1x32xf32>
    %35 = arith.truncf %34 : vector<1x32xf32> to vector<1x32xbf16>
    %c0_29 = arith.constant 0 : index
    %c0_30 = arith.constant 0 : index
    %36 = vector.load %arg6[%c0_29, %c0_30] : memref<32x128xbf16, #tpu.memory_space<vmem>>, vector<32x128xbf16>
    %cst_31 = arith.constant dense<0.000000e+00> : vector<1x128xf32>
    %37 = tpu.matmul %35, %36, %cst_31 {dimension_numbers = #tpu.dot_dimension_numbers<[1], [0], [0], [1], [0, 0, 1, 1], [], []>} : vector<1x32xbf16>, vector<32x128xbf16>, vector<1x128xf32> -> vector<1x128xf32>
    %c0_32 = arith.constant 0 : index
    %c0_33 = arith.constant 0 : index
    %38 = vector.load %arg7[%c0_32, %c0_33] : memref<1x128xf32, #tpu.memory_space<vmem>>, vector<1x128xf32>
    %39 = arith.addf %37, %38 : vector<1x128xf32>
    %40 = vector.shape_cast %39 : vector<1x128xf32> to vector<1x1x128xf32>
    %c0_34 = arith.constant 0 : index
    %c0_35 = arith.constant 0 : index
    %c0_36 = arith.constant 0 : index
    %41 = vector.load %arg9[%c0_34, %c0_35, %c0_36] : memref<1x1x128xf32, #tpu.memory_space<vmem>>, vector<1x1x128xf32>
    tpu.vector_store %arg9[%c0_34, %c0_35, %c0_36], %40 {strides = array<i32>} : memref<1x1x128xf32, #tpu.memory_space<vmem>>, vector<1x1x128xf32>,
    %c0_37 = arith.constant 0 : index
    %c0_38 = arith.constant 0 : index
    %c0_39 = arith.constant 0 : index
    %42 = vector.load %arg8[%c0_37, %c0_38, %c0_39] : memref<1x1x4xf32, #tpu.memory_space<vmem>>, vector<1x1x4xf32>
    %43 = vector.shape_cast %42 : vector<1x1x4xf32> to vector<1x4xf32>
    %44 = vector.extract_strided_slice %43 {offsets = [0, 3], sizes = [1, 1], strides = [1, 1]} : vector<1x4xf32> to vector<1x1xf32>
    %45 = arith.fptosi %44 : vector<1x1xf32> to vector<1x1xi32>
    %c0_i32 = arith.constant 0 : i32
    %c1_i32 = arith.constant 1 : i32
    %46 = vector.broadcast %c0_i32 : i32 to vector<1x1xi32>
    %47 = arith.maxsi %46, %45 : vector<1x1xi32>
    %48 = vector.broadcast %c1_i32 : i32 to vector<1x1xi32>
    %49 = arith.minsi %48, %47 : vector<1x1xi32>
    %50 = arith.sitofp %49 : vector<1x1xi32> to vector<1x1xf32>
    %51 = vector.extract_strided_slice %43 {offsets = [0, 0], sizes = [1, 3], strides = [1, 1]} : vector<1x4xf32> to vector<1x3xf32>
    %52 = vector.extract_strided_slice %39 {offsets = [0, 1], sizes = [1, 1], strides = [1, 1]} : vector<1x128xf32> to vector<1x1xf32>
    %53 = vector.extract_strided_slice %39 {offsets = [0, 0], sizes = [1, 1], strides = [1, 1]} : vector<1x128xf32> to vector<1x1xf32>
    %54 = arith.subf %52, %53 : vector<1x1xf32>
    %cst_40 = arith.constant 2.000000e+00 : f32
    %55 = vector.broadcast %cst_40 : f32 to vector<1x1xf32>
    %56 = arith.mulf %55, %50 : vector<1x1xf32>
    %cst_41 = arith.constant 1.000000e+00 : f32
    %57 = vector.broadcast %cst_41 : f32 to vector<1x1xf32>
    %58 = arith.subf %57, %56 : vector<1x1xf32>
    %59 = arith.mulf %58, %54 : vector<1x1xf32>
    %cst_42 = arith.constant 0.000000e+00 : f32
    %60 = vector.broadcast %cst_42 : f32 to vector<1x1xf32>
    %61 = arith.maximumf %59, %60 : vector<1x1xf32>
    %62 = math.absf %59 : vector<1x1xf32>
    %cst_43 = arith.constant 0.000000e+00 : f32
    %63 = vector.broadcast %cst_43 : f32 to vector<1x1xf32>
    %64 = arith.subf %63, %62 : vector<1x1xf32>
    %65 = math.exp %64 : vector<1x1xf32>
    %66 = math.log1p %65 : vector<1x1xf32>
    %67 = arith.addf %61, %66 : vector<1x1xf32>
    %68 = vector.extract_strided_slice %39 {offsets = [0, 2], sizes = [1, 3], strides = [1, 1]} : vector<1x128xf32> to vector<1x3xf32>
    %cst_44 = arith.constant 0.000000e+00 : f32
    %69 = vector.broadcast %cst_44 : f32 to vector<1x3xf32>
    %70 = arith.maximumf %68, %69 : vector<1x3xf32>
    %71 = arith.mulf %68, %51 : vector<1x3xf32>
    %72 = arith.subf %70, %71 : vector<1x3xf32>
    %73 = math.absf %68 : vector<1x3xf32>
    %cst_45 = arith.constant 0.000000e+00 : f32
    %74 = vector.broadcast %cst_45 : f32 to vector<1x3xf32>
    %75 = arith.subf %74, %73 : vector<1x3xf32>
    %76 = math.exp %75 : vector<1x3xf32>
    %77 = math.log1p %76 : vector<1x3xf32>
    %78 = arith.addf %72, %77 : vector<1x3xf32>
    %cst_46 = arith.constant dense<0.000000e+00> : vector<1xf32>
    %79 = vector.multi_reduction <add>, %78, %cst_46 [1] : vector<1x3xf32> to vector<1xf32>
    %80 = vector.shape_cast %79 : vector<1xf32> to vector<1x1xf32>
    %cst_47 = arith.constant 3.000000e+00 : f32
    %81 = vector.broadcast %cst_47 : f32 to vector<1x1xf32>
    %82 = arith.divf %80, %81 : vector<1x1xf32>
    %c0_i32_48 = arith.constant 0 : i32
    %83 = vector.broadcast %c0_i32_48 : i32 to vector<1x1xi32>
    %84 = arith.cmpi eq, %49, %83 : vector<1x1xi32>
    %85 = arith.extui %84 : vector<1x1xi1> to vector<1x1xi32>
    %86 = arith.sitofp %85 : vector<1x1xi32> to vector<1x1xf32>
    %87 = vector.shape_cast %67 : vector<1x1xf32> to vector<1x1x1xf32>
    %cst_49 = arith.constant dense<0.000000e+00> : vector<1xf32>
    %88 = vector.multi_reduction <add>, %87, %cst_49 [1, 2] : vector<1x1x1xf32> to vector<1xf32>
    %89 = vector.shape_cast %88 : vector<1xf32> to vector<1x1x1xf32>
    %90 = vector.extract %89[0, 0, 0] : f32 from vector<1x1x1xf32>
    %91 = arith.mulf %82, %86 : vector<1x1xf32>
    %92 = vector.shape_cast %91 : vector<1x1xf32> to vector<1x1x1xf32>
    %cst_50 = arith.constant dense<0.000000e+00> : vector<1xf32>
    %93 = vector.multi_reduction <add>, %92, %cst_50 [1, 2] : vector<1x1x1xf32> to vector<1xf32>
    %94 = vector.shape_cast %93 : vector<1xf32> to vector<1x1x1xf32>
    %95 = vector.extract %94[0, 0, 0] : f32 from vector<1x1x1xf32>
    %96 = vector.shape_cast %86 : vector<1x1xf32> to vector<1x1x1xf32>
    %cst_51 = arith.constant dense<0.000000e+00> : vector<1xf32>
    %97 = vector.multi_reduction <add>, %96, %cst_51 [1, 2] : vector<1x1x1xf32> to vector<1xf32>
    %98 = vector.shape_cast %97 : vector<1xf32> to vector<1x1x1xf32>
    %99 = vector.extract %98[0, 0, 0] : f32 from vector<1x1x1xf32>
    %100 = tpu.iota {dimensions = array<i32: 2>} : vector<1x1x128xi32>
    %c0_i32_52 = arith.constant 0 : i32
    %101 = vector.broadcast %c0_i32_52 : i32 to vector<1x1x128xi32>
    %102 = arith.cmpi eq, %100, %101 : vector<1x1x128xi32>
    %cst_53 = arith.constant 0.000000e+00 : f32
    %103 = vector.broadcast %90 : f32 to vector<1x1x128xf32>
    %104 = vector.broadcast %cst_53 : f32 to vector<1x1x128xf32>
    %105 = arith.select %102, %103, %104 : vector<1x1x128xi1>, vector<1x1x128xf32>
    %c1_i32_54 = arith.constant 1 : i32
    %106 = vector.broadcast %c1_i32_54 : i32 to vector<1x1x128xi32>
    %107 = arith.cmpi eq, %100, %106 : vector<1x1x128xi32>
    %cst_55 = arith.constant 0.000000e+00 : f32
    %108 = vector.broadcast %95 : f32 to vector<1x1x128xf32>
    %109 = vector.broadcast %cst_55 : f32 to vector<1x1x128xf32>
    %110 = arith.select %107, %108, %109 : vector<1x1x128xi1>, vector<1x1x128xf32>
    %111 = arith.addf %105, %110 : vector<1x1x128xf32>
    %c2_i32 = arith.constant 2 : i32
    %112 = vector.broadcast %c2_i32 : i32 to vector<1x1x128xi32>
    %113 = arith.cmpi eq, %100, %112 : vector<1x1x128xi32>
    %cst_56 = arith.constant 0.000000e+00 : f32
    %114 = vector.broadcast %99 : f32 to vector<1x1x128xf32>
    %115 = vector.broadcast %cst_56 : f32 to vector<1x1x128xf32>
    %116 = arith.select %113, %114, %115 : vector<1x1x128xi1>, vector<1x1x128xf32>
    %117 = arith.addf %111, %116 : vector<1x1x128xf32>
    %c0_57 = arith.constant 0 : index
    %c0_58 = arith.constant 0 : index
    %c0_59 = arith.constant 0 : index
    %118 = vector.load %arg10[%c0_57, %c0_58, %c0_59] : memref<1x1x128xf32, #tpu.memory_space<vmem>>, vector<1x1x128xf32>
    tpu.vector_store %arg10[%c0_57, %c0_58, %c0_59], %117 {strides = array<i32>} : memref<1x1x128xf32, #tpu.memory_space<vmem>>, vector<1x1x128xf32>,
    return
  }
  func.func @transform_0(%arg0: i32) -> (i32, i32, i32) {
    %c0_i32 = arith.constant 0 : i32
    %c0_i32_0 = arith.constant 0 : i32
    %c0_i32_1 = arith.constant 0 : i32
    return %arg0, %c0_i32, %c0_i32_0 : i32, i32, i32
  }
  func.func @transform_1(%arg0: i32) -> (i32, i32, i32) {
    %c0_i32 = arith.constant 0 : i32
    %c0_i32_0 = arith.constant 0 : i32
    %c0_i32_1 = arith.constant 0 : i32
    %c0_i32_2 = arith.constant 0 : i32
    return %c0_i32, %c0_i32_0, %c0_i32_1 : i32, i32, i32
  }
  func.func @transform_2(%arg0: i32) -> (i32, i32) {
    %c0_i32 = arith.constant 0 : i32
    %c0_i32_0 = arith.constant 0 : i32
    %c0_i32_1 = arith.constant 0 : i32
    return %c0_i32, %c0_i32_0 : i32, i32
  }
  func.func @transform_3(%arg0: i32) -> (i32, i32) {
    %c0_i32 = arith.constant 0 : i32
    %c0_i32_0 = arith.constant 0 : i32
    %c0_i32_1 = arith.constant 0 : i32
    return %c0_i32, %c0_i32_0 : i32, i32
  }
  func.func @transform_4(%arg0: i32) -> (i32, i32) {
    %c0_i32 = arith.constant 0 : i32
    %c0_i32_0 = arith.constant 0 : i32
    %c0_i32_1 = arith.constant 0 : i32
    return %c0_i32, %c0_i32_0 : i32, i32
  }
  func.func @transform_5(%arg0: i32) -> (i32, i32) {
    %c0_i32 = arith.constant 0 : i32
    %c0_i32_0 = arith.constant 0 : i32
    %c0_i32_1 = arith.constant 0 : i32
    return %c0_i32, %c0_i32_0 : i32, i32
  }
  func.func @transform_6(%arg0: i32) -> (i32, i32) {
    %c0_i32 = arith.constant 0 : i32
    %c0_i32_0 = arith.constant 0 : i32
    %c0_i32_1 = arith.constant 0 : i32
    return %c0_i32, %c0_i32_0 : i32, i32
  }
  func.func @transform_7(%arg0: i32) -> (i32, i32, i32) {
    %c0_i32 = arith.constant 0 : i32
    %c0_i32_0 = arith.constant 0 : i32
    %c0_i32_1 = arith.constant 0 : i32
    return %arg0, %c0_i32, %c0_i32_0 : i32, i32, i32
  }
  func.func @transform_8(%arg0: i32) -> (i32, i32, i32) {
    %c0_i32 = arith.constant 0 : i32
    %c0_i32_0 = arith.constant 0 : i32
    %c0_i32_1 = arith.constant 0 : i32
    return %arg0, %c0_i32, %c0_i32_0 : i32, i32, i32
  }
  func.func @transform_9(%arg0: i32) -> (i32, i32, i32) {
    %c0_i32 = arith.constant 0 : i32
    %c0_i32_0 = arith.constant 0 : i32
    %c0_i32_1 = arith.constant 0 : i32
    return %arg0, %c0_i32, %c0_i32_0 : i32, i32, i32
  }
}

</mosaic_0001>

<bundles_post_ra>
// kernel: tpu_custom_call.1
= control target key start
LH: loop header
LB: loop body
LE: loop exit
PB: predicated region body
PF: predicated region fallthrough
CT: control target
= control target key end

     0   :  { %s1866_s0 = inlined_call_operand.vmem [shape: bf16[2,18,72], index: 0, kind: input, shape index: {}]   ;;  %s1867_s1 = inlined_call_operand.hbm [shape: bf16[3,72,128], index: 1, kind: input, shape index: {}]   ;;  %s1868_s2 = inlined_call_operand.vmem [shape: f32[1,128], index: 2, kind: input, shape index: {}]   ;;  %s1869_s3 = inlined_call_operand.vmem [shape: bf16[8,32], index: 3, kind: input, shape index: {}]   ;;  %s1870_s4 = inlined_call_operand.vmem [shape: f32[1,32], index: 4, kind: input, shape index: {}]   ;;  %s1871_s5 = inlined_call_operand.vmem [shape: bf16[32,128], index: 5, kind: input, shape index: {}]   ;;  %s1872_s6 = inlined_call_operand.vmem [shape: f32[1,128], index: 6, kind: input, shape index: {}]   ;;  %s1873_s7 = inlined_call_operand.vmem [shape: f32[2,1,4], index: 7, kind: input, shape index: {}]   ;;  %s1874_s8 = inlined_call_operand.hbm [shape: f32[2,1,128], index: 8, kind: output, shape index: {0}]   ;;  %s1875_s9 = inlined_call_operand.hbm [shape: f32[2,1,128], index: 9, kind: output, shape index: {1}]  }
   0x1   :  { %1877 = sst [smem:[#allocation11_spill]] %s1866_s0 }
   0x2   :  { %1878 = sst [smem:[#allocation12_spill]] %s1867_s1 }
   0x3   :  { %15 = vsyncpa [#allocation3], 0 }
   0x4   :  { %16 = vsyncpa [#allocation4], 0 }
   0x5   :  { %18 = vsyncpa [#allocation4 + $0x1], 0 }
   0x6   :  { %19 = vsyncpa [#allocation7], 0 }
   0x7   :  { %21 = vsyncpa [#allocation7 + $0x1], 0  ;;  %s1634_s30 = smov 0   ;;  %s1636_s10 = smov 0  }
   0x8   :  { %s1638_s11 = smov 0   ;;  %s1640_s12 = smov 0  }
   0x9 LB: > { %s1655_s13 = sadd.s32 4294967295, %s1553_s12   ;;  %s1198_s14 = sadd.s32 4294967294, %s1553_s12   ;;  %s1553_s12 = sphi %s1640_s12, %s1889_s12   ;;  %s1549_s11 = sphi %s1638_s11, %s1888_s11   ;;  %s1545_s10 = sphi %s1636_s10, %s1887_s10   ;;  %s1541_s30 = sphi %s1634_s30, %s1886_s30  }
   0xa   : > { %s1659_s15 = sadd.s32 1, %s1553_s12   ;;  %s212_s16 = sadd.s32 1, %s1549_s11 }
   0xb   : > { %s209_s17 = ssub.s32 %s1553_s12, %s1659_s15  ;;  %p222_p0 = scmp.ne.s32.totalorder %s1549_s11, %s1545_s10 }
   0xc   : > { %p210_p1 = scmp.eq.s32.totalorder %s209_s17, 0  ;;  %p223_p2 = scmp.eq.s32.totalorder %s1655_s13, 1 }
   0xd   : > { %p228_p3 = scmp.ne.s32.totalorder %s1545_s10, %s1541_s30  ;;  %p229_p4 = scmp.eq.s32.totalorder %s1198_s14, 1 }
   0xe   : > { %s1670_s18 = scalar_select %p210_p1, %s1549_s11, %s212_s16  }
   0xf   : > { %p1672_p5 = por %p223_p2, %p222_p0  ;;  %p1676_p6 = por %p229_p4, %p228_p3 }
  0x10   : > { %p1199_p7 = scmp.ge.s32.totalorder %s1553_s12, 1  ;;  %p262_p8 = scmp.lt.s32.totalorder %s1553_s12, 3 }
  0x11   : > { %s1880_s20 = scalar_select %p1676_p6, 1, 0 }
  0x12   : > { %p1343_p9 = scmp.eq.s32.totalorder %s1655_s13, 0  ;;  %p1683_p10 = pnand %p1199_p7, %p262_p8 }
  0x13   : > { %s1555_s22 = smov [#allocation2]  }
  0x14   : > { %s274_s23 = sshll.u32 %s1555_s22, 4  ;;  %p1332_p11 = pneg %p1683_p10  ;;  %s275_s23 = int_to_ptr.vmem [resolvable:$true] %s274_s23 }
  0x15   : > { %s1444_s24 = scalar_lea.vmem %s275_s23, 1728  ;;  %p1452_p3 = scmp.lt.s32.totalorder %s275_s23, %s275_s23 }
  0x16   : > { %p1333_p12 = pnand %p1343_p9, %p1332_p11  ;;  %p1445_p0 = scmp.ne.s32.totalorder %s275_s23, %s1444_s24 }
  0x17   : > { %p1453_p4 = scmp.lt.s32.totalorder %s1444_s24, %s1444_s24 }
  0x18   : > { %p1435_p13 = pneg %p1333_p12 }
  0x19   : > { %p1454_p6 = por %p1453_p4, %p1452_p3 }
  0x1a   : > { %p1447_p1 = pnand %p1445_p0, %p1435_p13 }
  0x1c   : > { %p1448_p2 = pneg %p1447_p1 }
  0x1e   : > { %p1455_p7 = pnand %p1454_p6, %p1448_p2 }
  0x20   : > { %1458 = shalt.err (!%p1455_p7)
}
  0x21   : > { %s1556_s25 = smov 64   ;;  %s1557_s26 = smov 4  }
  0x22   : > { %s1882_s1 = sld [smem:[#allocation12_spill]] }
  0x24   : > { %319 = sbr.rel (%p1683_p10) target bundleno = 1330 (0x532), region = 52 }
  0x28   : > { %1335 = dma.hbm_to_vmem [thread:$0]  (!%p1333_p12), %s1882_s1, 1728, %s275_s23, [#allocation3], %s1556_s25, %s1556_s25, %s1557_s26  }
  0x29   : > { %1528 = dma.done.wait (%p1343_p9), [#allocation3], 1728  }
  0x2a   : > { %1530 = vsyncadd (%p1343_p9), [#allocation3], 4294965568  ;;  %v1558_v0 = vmov 0.0   ;;  %p361_p6 = scmp.lt.s32.totalorder %s1655_s13, 1  ;;  %vm1559_vm0 = vmmov 0   ;;  %vm444_vm1 = vcmask 1043456  }
  0x2b   : > { %1259 = vmatprep.subr.bf16.mxu0 %v1558_v0  ;;  %1273 = vmatprep.subr.bf16.mxu1 %v1558_v0  ;;  %v1405_v1 = vld [vmem:[#allocation2 + $0x44] ss:$0 sps:$4 sm:$0xff]   ;;  %v1406_v2 = vld [vmem:[#allocation2 + $0x20] ss:$0 sps:$4 sm:$0xff]   ;;  %v1408_v6 = vld [vmem:[#allocation2 + $0x18] sm:$0xff]   ;;  %s1883_s0 = sld [smem:[#allocation11_spill]] }
  0x2c   : > { %1269 = vmatprep.mubr.msk.bf16.mxu0 %vm1559_vm0, %v1558_v0  ;;  %1283 = vmatprep.mubr.msk.bf16.mxu1 %vm1559_vm0, %v1558_v0  ;;  %s1708_s29 = scalar_select %p361_p6, %s1655_s13, 1  ;;  %v446_v3 = vsel %vm444_vm1, %v1405_v1, 0  ;;  %v519_v4 = vsel %vm444_vm1, %v1406_v2, 0  ;;  %v1407_v5 = vld [vmem:[#allocation2 + $0x3c] sm:$0xff]   ;;  %v1409_v7 = vld [vmem:[#allocation2 + $0x34] sm:$0xff]   ;;  %v1411_v13 = vld [vmem:[#allocation2 + $0x2c] sm:$0xff]  }
  0x2d   : > { %1260 = vmatpush3.bf16.msra.mxu0 %v446_v3  ;;  %1274 = vmatpush3.bf16.msra.mxu1 %v519_v4  ;;  %v1410_v8 = vld [vmem:[#allocation2 + $0x10] sm:$0xff]   ;;  %v1412_v14 = vld [vmem:[#allocation2 + $0x8] sm:$0xff]   ;;  %vm400_vm2 = vsmask.f32 7424  ;;  %v1414_v20 = vld [vmem:[#allocation2] sm:$0xff]   ;;  %vm440_vm3 = vcmask 588800  }
  0x2e   : > { %s1315_s14 = smul.u32 12, %s1708_s29  ;;  %1261 = vmatprep.subr.bf16.mxu0 %v1558_v0  ;;  %1275 = vmatprep.subr.bf16.mxu1 %v1558_v0  ;;  %v1413_v18 = vld [vmem:[#allocation2 + $0x24] sm:$0xff]   ;;  %v1419_v27 = vld [vmem:[#allocation2 + $0x58] sm:$0xff]   ;;  %v1420_v29 = vld [vmem:[#allocation2 + $0x50] sm:$0xff]   ;;  %vm576_vm4 = vcmask 1046528   ;;  %s1560_s24 = smov 104  }
  0x2f   : > { %v1417_v23 = vld [vmem:[#allocation2 + $0x68] ss:$0 sps:$4 sm:$0xff]   ;;  %v1418_v26 = vld [vmem:[#allocation2 + $0x60] sm:$0xff]   ;;  %s1561_s25 = smov 120   ;;  %s1562_s26 = smov 96   ;;  %vm818_vm5 = vcmask 64512  }
  0x30   : > { %v611_v25 = vsel %vm444_vm1, %v1417_v23, 0  ;;  %v1421_v31 = vld [vmem:[#allocation2 + $0x48] sm:$0xff]   ;;  %v1226_v46 = vld [vmem:[%s1868_s2] ss:$0 sm:$0xff]  ;;  %s1563_s27 = smov 112   ;;  %s1564_s28 = smov 80  }
  0x31   : > { %s1718_s21 = scalar_lea.vmem %s1883_s0, %s1315_s14  ;;  %1262 = vmatpush3.bf16.msra.mxu0 %v1407_v5  ;;  %1276 = vmatpush3.bf16.msra.mxu1 %v1408_v6  ;;  %s1565_s14 = smov 88   ;;  %v830_v63 = vld [vmem:[%s1869_s3] sm:$0xf]  ;;  %vm896_vm6 = vcmask 261120   ;;  %vm1018_vm11 = vcmask 16384  }
  0x32   : > { %1263 = vmatprep.subr.bf16.mxu0 %v1558_v0  ;;  %1277 = vmatprep.subr.bf16.mxu1 %v1558_v0  ;;  %v370_v9 = vld [vmem:[%s1718_s21] sm:$0xf]  ;;  %v371_v10 = vld [vmem:[%s1718_s21 + $0x4] sm:$0xf]  ;;  %s1566_s16 = smov 64   ;;  %s1567_s17 = smov 72  }
  0x33   : > { %v1205_v11 = vcombine.low %v370_v9, %v371_v10  ;;  %v1416_v12 = vld [vmem:[%s1718_s21 + $0x8] ss:$0 sps:$4 sm:$0x11]   ;;  %v562_v28 = vld [vmem:[%s1718_s21] sm:$0xe]  ;;  %s1568_s21 = smov 48  }
  0x34   : > { %v409_v17 = vshll.u32 %v1416_v12, 16  ;;  %v1219_v30 = vcombine.low %v562_v28, %v371_v10  ;;  %v578_v33 = vrot.slane %v1416_v12, 1  ;;  %s1569_s22 = smov 56   ;;  %s1570_s23 = smov 32   ;;  %v836_v1 = vsel %vm444_vm1, %v830_v63, 0  ;;  %v1423_v63 = vld [vmem:[%s1871_s5 + $0x8] sm:$0xff]  }
  0x35   : > { %1264 = vmatpush3.bf16.msra.mxu0 %v1409_v7  ;;  %1278 = vmatpush3.bf16.msra.mxu1 %v1410_v8  ;;  %v402_v15 = vshrl.u32 %v1205_v11, 16  ;;  %v404_v16 = vshll.u32 %v1205_v11, 16  ;;  %v1575_v10 = vmov 1983009808   ;;  %v724_v12 = vlaneseq }
  0x36   : > { %1265 = vmatprep.subr.bf16.mxu0 %v1558_v0  ;;  %1279 = vmatprep.subr.bf16.mxu1 %v1558_v0  ;;  %v411_v21 = vrot.slane %v409_v17, 1  ;;  %v577_v32 = vrot.slane %v1219_v30, 1 }
  0x37   : > { %v406_v19 = vrot.slane %v404_v16, 1  ;;  %v1770_v16 = vshrl.u32 %v724_v12, 7 }
  0x38   : > { %v579_v34 = vsel %vm576_vm4, %v577_v32, %v578_v33 }
  0x39   : > { %1266 = vmatpush3.bf16.msra.mxu0 %v1411_v13  ;;  %1280 = vmatpush3.bf16.msra.mxu1 %v1412_v14  ;;  %v407_v22 = vor.u32 %v406_v19, %v402_v15 }
  0x3a   : > { %1267 = vmatprep.subr.bf16.mxu0 %v1558_v0  ;;  %1281 = vmatprep.subr.bf16.mxu1 %v1558_v0 }
  0x3b   : > { %v412_v24 = vsel %vm400_vm2, %v407_v22, %v411_v21  ;;  %v1576_v21 = vmov 1934713408  }
  0x3c   : > { %v754_v22 = vunpack.c.l.s4 %v1576_v21 }
  0x3d   : > { %1268 = vmatpush3.bf16.msra.mxu0 %v1413_v18  ;;  %1282 = vmatpush3.bf16.msra.mxu1 %v1414_v20 }
  0x3e   : > { %1287 = vmatprep.subr.bf16.mxu0 %v1558_v0  ;;  %1301 = vmatprep.subr.bf16.mxu1 %v1558_v0  ;;  %v755_v30 = vunpack.c.0.s8 %v754_v22 }
  0x40   : > { %1270 = vmatmul.mubr.msk.bf16.vlgmr.msra.gmra.mxu0 %vm440_vm3, %v412_v24  ;;  %1284 = vmatmul.mubr.msk.bf16.vlgmr.msra.gmra.mxu1 %vm440_vm3, %v1205_v11  ;;  %v722_v11 = vunpack.c.l.s4 %v1575_v10 }
  0x41   : > { %1288 = vmatpush3.bf16.msra.mxu0 %v611_v25  ;;  %1297 = vmatprep.mubr.msk.bf16.mxu0 %vm1559_vm0, %v1558_v0 }
  0x42   : > { %1289 = vmatprep.subr.bf16.mxu0 %v1558_v0  ;;  %1303 = vmatprep.mubr.msk.bf16.mxu1 %vm1559_vm0, %v1558_v0  ;;  %v723_v15 = vunpack.c.0.s8 %v722_v11 }
  0x43   : > { %1302 = vmatpush3.bf16.msra.mxu1 %v836_v1 }
  0x44   : > { %1307 = vmatprep.subr.bf16.mxu1 %v1558_v0  ;;  %v726_v20 = vsub.s32 %v723_v15, %v1770_v16 }
  0x45   : > { %1290 = vmatpush3.bf16.msra.mxu0 %v1418_v26 }
  0x46   : > { %1291 = vmatprep.subr.bf16.mxu0 %v1558_v0 }
  0x49   : > { %1292 = vmatpush3.bf16.msra.mxu0 %v1419_v27 }
  0x4a   : > { %1293 = vmatprep.subr.bf16.mxu0 %v1558_v0 }
  0x4d   : > { %1294 = vmatpush3.bf16.msra.mxu0 %v1420_v29 }
  0x4e   : > { %1295 = vmatprep.subr.bf16.mxu0 %v1558_v0 }
  0x51   : > { %1296 = vmatpush3.bf16.msra.mxu0 %v1421_v31 }
  0x54   : > { %1298 = vmatmul.mubr.msk.bf16.vlgmr.msra.gmra.mxu0 %vm440_vm3, %v579_v34 }
 0x100   : > { %v482_v35 = vpop.f32.mrf.mxu0  ;;  %v555_v36 = vpop.f32.mrf.mxu1 }
 0x101   : > { %v556_v43 = vadd.f32 %v555_v36, %v482_v35 }
 0x102   : > { %v1271_v37 = vpop.f32.mrf.mxu0  ;;  %v1285_v38 = vpop.f32.mrf.mxu1 }
 0x104   : > { %v485_v39 = vpop.f32.mrf.mxu0  ;;  %v558_v40 = vpop.f32.mrf.mxu1 }
 0x105   : > { %v559_v48 = vadd.f32 %v558_v40, %v485_v39  ;;  %v758_v39 = vsub.s32 %v755_v30, %v1770_v16 }
 0x106   : > { %v1272_v41 = vpop.f32.mrf.mxu0  ;;  %v1286_v42 = vpop.f32.mrf.mxu1 }
 0x114   : > { %v647_v44 = vpop.f32.mrf.mxu0 }
 0x115   : > { %v654_v45 = vadd.f32 %v647_v44, %v556_v43 }
 0x116   : > { %v1299_v47 = vpop.f32.mrf.mxu0 }
 0x117   : > { %v663_v50 = vadd.f32 %v1226_v46, %v654_v45 }
 0x118   : > { %v650_v49 = vpop.f32.mrf.mxu0 }
 0x119   : > { %v655_v51 = vadd.f32 %v650_v49, %v559_v48  ;;  %v665_v54 = vmax.f32 %v663_v50, 0.0 }
 0x11a   : > { %v1300_v52 = vpop.f32.mrf.mxu0 }
 0x11b   : > { %v664_v53 = vadd.f32 %v1226_v46, %v655_v51 }
 0x11d   : > { %v666_v55 = vmax.f32 %v664_v53, 0.0 }
 0x11f   : > { %v667_v56 = vadd.f32 %v666_v55, %v665_v54 }
 0x121   : > { %v668_v57 = vrot.slane %v667_v56, 4 }
 0x123   : > { %v669_v58 = vadd.f32 %v668_v57, %v667_v56 }
 0x125   : > { %v670_v59 = vrot.slane %v669_v58, 2 }
 0x127   : > { %v671_v60 = vadd.f32 %v670_v59, %v669_v58 }
 0x129   : > { %v672_v61 = vrot.slane %v671_v60, 1 }
 0x12b   : > { %v1747_v62 = vadd.f32 %v672_v61, %v671_v60 }
 0x12d   : > { %681 = vrot.lane.b32.xlu1 %v1747_v62, %s1560_s24  ;;  %675 = vrot.lane.b32.xlu0 %v1747_v62, %s1561_s25  ;;  %s1571_s24 = smov 40   ;;  %s368_s25 = scalar_lea.vmem %s1873_s7, %s1708_s29 }
 0x12e   : > { %s1794_s29 = sand.u32 1, %s1545_s10  }
 0x131   : > { %684 = vrot.lane.b32.xlu1 %v1747_v62, %s1562_s26  ;;  %678 = vrot.lane.b32.xlu0 %v1747_v62, %s1563_s27  ;;  %s1572_s27 = smov 16   ;;  %s1577_s26 = smov 2  }
 0x135   : > { %690 = vrot.lane.b32.xlu1 %v1747_v62, %s1564_s28  ;;  %687 = vrot.lane.b32.xlu0 %v1747_v62, %s1565_s14  ;;  %s1573_s28 = smov 24   ;;  %s1574_s14 = smov 8  }
 0x139   : > { %696 = vrot.lane.b32.xlu1 %v1747_v62, %s1566_s16  ;;  %693 = vrot.lane.b32.xlu0 %v1747_v62, %s1567_s17  ;;  %s1578_s17 = smov 1  }
 0x13d   : > { %702 = vrot.lane.b32.xlu1 %v1747_v62, %s1568_s21  ;;  %699 = vrot.lane.b32.xlu0 %v1747_v62, %s1569_s22  ;;  %s354_s21 = scalar_lea.vmem [#allocation5], %s1794_s29  ;;  %s1579_s22 = smov 126  }
 0x141   : > { %708 = vrot.lane.b32.xlu1 %v1747_v62, %s1570_s23  ;;  %705 = vrot.lane.b32.xlu0 %v1747_v62, %s1571_s24  ;;  %s1580_s23 = smov 125   ;;  %s1876_s24 = sshll.u32 %s1655_s13, 4 }
 0x145   : > { %714 = vrot.lane.b32.xlu1 %v1747_v62, %s1572_s27  ;;  %711 = vrot.lane.b32.xlu0 %v1747_v62, %s1573_s28  ;;  %s1079_s27 = scalar_lea.hbm %s1874_s8, %s1876_s24  ;;  %s1081_s28 = sshll.u32 %s354_s21, 4  ;;  %s1082_s28 = int_to_ptr.vmem [resolvable:$true] %s1081_s28 }
 0x146   : > { %s1459_s16 = scalar_lea.vmem %s1082_s28, 16 }
 0x147   : > { %p1460_p8 = scmp.ne.s32.totalorder %s1082_s28, %s1459_s16 }
 0x149   : > { %717 = vrot.lane.b32.xlu0 %v1747_v62, %s1574_s14  ;;  %s1065_s14 = scalar_lea.sflag [#allocation4], %s1794_s29  ;;  %p1461_p9 = pnand %p1460_p8, %p1672_p5 }
 0x14b   : > { %p1462_p10 = pneg %p1461_p9 }
 0x19f   : > { %v682_v2 = vpop.permute.xlu1 %681  ;;  %v676_v3 = vpop.permute.xlu0 %675 }
 0x1a0   : > { %v728_v25 = vcombine.low %v676_v3, %v682_v2  ;;  %v1424_v2 = vld [vmem:[%s1871_s5] sm:$0xff]   ;;  %v993_v3 = vsub.s32 0, %v1770_v16 }
 0x1a2   : > { %v735_v34 = vrot.slane %v728_v25, %v726_v20 }
 0x1a3   : > { %v685_v4 = vpop.permute.xlu1 %684  ;;  %v679_v5 = vpop.permute.xlu0 %678 }
 0x1a4   : > { %v720_v23 = vcombine.low %v1747_v62, %v679_v5 }
 0x1a6   : > { %v727_v31 = vrot.slane %v720_v23, %v726_v20 }
 0x1a7   : > { %v691_v6 = vpop.permute.xlu1 %690  ;;  %v688_v7 = vpop.permute.xlu0 %687 }
 0x1a8   : > { %v736_v24 = vcombine.low %v685_v4, %v691_v6  ;;  %v752_v40 = vcombine.low %v727_v31, %v735_v34  ;;  %v941_v4 = vld [vmem:[%s368_s25] sm:$0x1] }
 0x1a9   : > { %v994_v5 = vrot.slane %v941_v4, %v993_v3  ;;  %v831_v6 = vld [vmem:[%s1870_s4] sm:$0x1] }
 0x1aa   : > { %v743_v32 = vrot.slane %v736_v24, %v726_v20  ;;  %v759_v47 = vrot.slane %v752_v40, %v758_v39  ;;  %v1316_v24 = vtrunc.f32 %v941_v4 }
 0x1ab   : > { %v697_v8 = vpop.permute.xlu1 %696  ;;  %v694_v9 = vpop.permute.xlu0 %693  ;;  %995 = vrot.lane.b32.xlu0 %v994_v5, %s1577_s26 }
 0x1ac   : > { %v744_v17 = vcombine.low %v688_v7, %v694_v9 }
 0x1ae   : > { %v751_v26 = vrot.slane %v744_v17, %v726_v20 }
 0x1af   : > { %v703_v13 = vpop.permute.xlu1 %702  ;;  %v700_v14 = vpop.permute.xlu0 %699 }
 0x1b0   : > { %v769_v33 = vcombine.low %v697_v8, %v703_v13  ;;  %v760_v35 = vcombine.low %v743_v32, %v751_v26 }
 0x1b2   : > { %v776_v41 = vrot.slane %v769_v33, %v726_v20  ;;  %v767_v43 = vrot.slane %v760_v35, %v758_v39 }
 0x1b3   : > { %v709_v18 = vpop.permute.xlu1 %708  ;;  %v706_v19 = vpop.permute.xlu0 %705 }
 0x1b4   : > { %v777_v27 = vcombine.low %v700_v14, %v706_v19  ;;  %v768_v49 = vcombine.low %v759_v47, %v767_v43  ;;  %v883_v14 = vld [vmem:[%s1872_s6] sm:$0x1] }
 0x1b6   : > { %v784_v36 = vrot.slane %v777_v27, %v726_v20  ;;  %v819_v53 = vsel %vm818_vm5, %v768_v49, 0.0  ;;  %v1317_v27 = vcvt.f32.s32 %v1316_v24 }
 0x1b7   : > { %v715_v28 = vpop.permute.xlu1 %714  ;;  %v712_v29 = vpop.permute.xlu0 %711 }
 0x1b8   : > { %v785_v37 = vcombine.low %v709_v18, %v715_v28  ;;  %v801_v44 = vcombine.low %v776_v41, %v784_v36  ;;  %vm943_vm7 = vcmp.gt.s32.totalorder %v1317_v27, 0 }
 0x1ba   : > { %v792_v45 = vrot.slane %v785_v37, %v726_v20  ;;  %v808_v50 = vrot.slane %v801_v44, %v758_v39  ;;  %v1581_v44 = vmov 1966171168  }
 0x1bb   : > { %v718_v38 = vpop.permute.xlu0 %717 }
 0x1bc   : > { %v793_v42 = vcombine.low %v712_v29, %v718_v38  ;;  %v944_v29 = vsel %vm943_vm7, %v1317_v27, 0 }
 0x1bd   : > { %vm945_vm8 = vcmp.lt.s32.totalorder %v944_v29, 1 }
 0x1be   : > { %v800_v46 = vrot.slane %v793_v42, %v726_v20  ;;  %v946_v32 = vsel %vm945_vm8, %v944_v29, 1 }
 0x1bf   : > { %vm1024_vm9 = vcmp.eq.s32.totalorder %v946_v32, 0 }
 0x1c0   : > { %v809_v48 = vcombine.low %v792_v45, %v800_v46  ;;  %v1231_v41 = vsel %vm1024_vm9, 1.0, %v1558_v0  ;;  %v957_v45 = vunpack.c.l.s4 %v1581_v44 }
 0x1c1   : > { %v1037_v43 = vrot.slane %v1231_v41, %v993_v3 }
 0x1c2   : > { %v816_v51 = vrot.slane %v809_v48, %v758_v39  ;;  %v958_v46 = vunpack.c.0.s8 %v957_v45 }
 0x1c4   : > { %v817_v52 = vcombine.low %v808_v50, %v816_v51  ;;  %v961_v47 = vsub.s32 %v958_v46, %v1770_v16 }
 0x1c6   : > { %v820_v54 = vsel %vm818_vm5, %v817_v52, 0.0 }
 0x1c7   : > { %v821_v55 = vadd.f32 %v820_v54, %v819_v53  ;;  %v947_v53 = vcvt.s32.f32 %v946_v32 }
 0x1c9   : > { %v822_v56 = vrot.slane %v821_v55, 4  ;;  %v953_v54 = vmul.f32 2.0, %v947_v53 }
 0x1cb   : > { %v823_v57 = vadd.f32 %v822_v56, %v821_v55  ;;  %v954_v55 = vsub.f32 1.0, %v953_v54 }
 0x1cd   : > { %v824_v58 = vrot.slane %v823_v57, 2 }
 0x1cf   : > { %v825_v59 = vadd.f32 %v824_v58, %v823_v57 }
 0x1d1   : > { %v826_v60 = vrot.slane %v825_v59, 1 }
 0x1d3   : > { %v827_v61 = vadd.f32 %v826_v60, %v825_v59 }
 0x1d5   : > { %v828_v62 = vmul.f32 0.00390625, %v827_v61 }
 0x1d7   : > { %v829_v1 = vpack.c.bf16 %v828_v62, %v828_v62 }
 0x1d9   : > { %1304 = vmatmul.mubr.msk.bf16.vlgmr.msra.gmra.mxu1 %vm818_vm5, %v829_v1 }
 0x1da   : > { %1308 = vmatpush3.bf16.msra.mxu1 %v1423_v63  ;;  %1311 = vmatprep.mubr.msk.bf16.mxu1 %vm1559_vm0, %v1558_v0 }
 0x1db   : > { %1309 = vmatprep.subr.bf16.mxu1 %v1558_v0 }
 0x1de   : > { %1310 = vmatpush3.bf16.msra.mxu1 %v1424_v2 }
 0x21d   : > { %v996_v30 = vpop.permute.xlu0 %995 }
 0x299   : > { %v872_v7 = vpop.f32.mrf.mxu1 }
 0x29a   : > { %v873_v8 = vadd.f32 %v872_v7, %v831_v6 }
 0x29b   : > { %v1305_v9 = vpop.f32.mrf.mxu1 }
 0x29c   : > { %v878_v10 = vpack.c.bf16 %v873_v8, %v873_v8 }
 0x29d   : > { %v875_v11 = vpop.f32.mrf.mxu1 }
 0x29e   : > { %1312 = vmatmul.mubr.msk.bf16.vlgmr.msra.gmra.mxu1 %vm896_vm6, %v878_v10 }
 0x29f   : > { %v1306_v13 = vpop.f32.mrf.mxu1 }
 0x35e   : > { %v934_v15 = vpop.f32.mrf.mxu1 }
 0x35f   : > { %v935_v17 = vadd.f32 %v934_v15, %v883_v14 }
 0x360   : > { %v1313_v18 = vpop.f32.mrf.mxu1 }
 0x361   : > { %v1000_v19 = vand.u32 2147483647, %v935_v17  ;;  %949 = vrot.lane.b32.xlu1 %v935_v17, %s1578_s17  ;;  %940 = vst [vmem:[%s354_s21] sm:$0x1] %v935_v17  ;;  %v989_v33 = vmax.f32 %v935_v17, 0.0  ;;  %v998_v34 = vmul.f32 %v996_v30, %v935_v17  ;;  %s1582_s17 = smov [#allocation5]  }
 0x362   : > { %v937_v20 = vpop.f32.mrf.mxu1 }
 0x363   : > { %v1001_v21 = vsub.f32 0.0, %v1000_v19  ;;  %v999_v39 = vsub.f32 %v989_v33, %v998_v34 }
 0x364   : > { %v1314_v22 = vpop.f32.mrf.mxu1 }
 0x365   : > { %v1002_v23 = vmul.f32 1.442695, %v1001_v21 }
 0x367   : > { %1425 = vpow2.f32 %v1002_v23 }
 0x374   : > { %v1426_v25 = vpop.eup %1425 }
 0x375   : > { %v1004_v26 = vadd.f32 1.0, %v1426_v25  ;;  %v1007_v28 = vmul.f32 -0.5, %v1426_v25  ;;  %v1010_v35 = vand.u32 2147483647, %v1426_v25 }
 0x377   : > { %1427 = vlog2.f32 %v1004_v26  ;;  %v1008_v31 = vadd.f32 1.0, %v1007_v28  ;;  %vm1011_vm10 = vcmp.lt.f32.partialorder %v1010_v35, 0.0004427343 }
 0x379   : > { %v1009_v38 = vmul.f32 %v1426_v25, %v1008_v31 }
 0x384   : > { %v1428_v36 = vpop.eup %1427 }
 0x385   : > { %v1006_v37 = vmul.f32 0.6931472, %v1428_v36 }
 0x387   : > { %v1012_v40 = vsel %vm1011_vm10, %v1009_v38, %v1006_v37 }
 0x388   : > { %v1013_v42 = vadd.f32 %v1012_v40, %v999_v39 }
 0x38a   : > { %1015 = vrot.lane.b32.xlu0 %v1013_v42, %s1579_s22  ;;  %s1463_s22 = sshll.u32 %s1582_s17, 4  ;;  %s1464_s22 = int_to_ptr.vmem [resolvable:$false] %s1463_s22 }
 0x38b   : > { %s1465_s0 = scalar_lea.vmem %s1464_s22, 32  ;;  %p1466_p11 = scmp.lt.s32.totalorder %s1082_s28, %s1464_s22 }
 0x38c   : > { %p1467_p12 = scmp.lt.s32.totalorder %s1465_s0, %s1459_s16 }
 0x38e   : > { %1038 = vrot.lane.b32.xlu0 %v1037_v43, %s1580_s23  ;;  %p1468_p13 = por %p1467_p12, %p1466_p11 }
 0x390   : > { %p1469_p0 = pnand %p1468_p13, %p1462_p10 }
 0x3d3   : > { %v950_v48 = vpop.permute.xlu1 %949 }
 0x3d4   : > { %v952_v49 = vsub.f32 %v935_v17, %v950_v48 }
 0x3d6   : > { %v962_v50 = vrot.slane %v952_v49, %v961_v47 }
 0x3d8   : > { %v969_v51 = vrot.slane %v962_v50, %v961_v47 }
 0x3da   : > { %970 = vrot.lane.b32.xlu1 %v969_v51, %s1577_s26 }
 0x3fc   : > { %v1016_v0 = vpop.permute.xlu0 %1015 }
 0x3fd   : > { %v1019_v52 = vsel %vm1018_vm11, %v1016_v0, 0.0 }
 0x3fe   : > { %1020 = vadd.xlane.f32.xlu1 %v1019_v52 }
 0x44c   : > { %v971_v56 = vpop.permute.xlu1 %970 }
 0x44d   : > { %v973_v57 = vmul.f32 %v971_v56, %v954_v55 }
 0x44f   : > { %v975_v58 = vand.u32 2147483647, %v973_v57  ;;  %v974_v5 = vmax.f32 %v973_v57, 0.0 }
 0x451   : > { %v976_v59 = vsub.f32 0.0, %v975_v58 }
 0x453   : > { %v977_v60 = vmul.f32 1.442695, %v976_v59 }
 0x455   : > { %1429 = vpow2.f32 %v977_v60 }
 0x462   : > { %v1430_v16 = vpop.eup %1429 }
 0x463   : > { %v979_v61 = vadd.f32 1.0, %v1430_v16  ;;  %v982_v62 = vmul.f32 -0.5, %v1430_v16  ;;  %v985_v1 = vand.u32 2147483647, %v1430_v16 }
 0x465   : > { %1431 = vlog2.f32 %v979_v61  ;;  %v983_v63 = vadd.f32 1.0, %v982_v62  ;;  %vm986_vm12 = vcmp.lt.f32.partialorder %v985_v1, 0.0004427343 }
 0x467   : > { %v984_v4 = vmul.f32 %v1430_v16, %v983_v63 }
 0x472   : > { %v1432_v2 = vpop.eup %1431 }
 0x473   : > { %v981_v3 = vmul.f32 0.6931472, %v1432_v2 }
 0x475   : > { %v987_v6 = vsel %vm986_vm12, %v984_v4, %v981_v3 }
 0x476   : > { %v988_v7 = vadd.f32 %v987_v6, %v974_v5 }
 0x478   : > { %1029 = vrot.lane.b32.xlu0 %v988_v7, %s1580_s23 }
 0x47c   : > { %1046 = vrot.lane.b32.xlu0 %v1231_v41, %s1580_s23 }
 0x47d   : > { %1472 = shalt.err (!%p1469_p0)
}
 0x47e   : > { %s1473_s23 = scalar_lea.hbm %s1079_s27, 16  ;;  %s1477_s26 = scalar_lea.hbm %s1874_s8, 32 }
 0x47f   : > { %p1474_p1 = scmp.ne.s32.totalorder %s1079_s27, %s1473_s23  ;;  %p1478_p4 = scmp.lt.s32.totalorder %s1079_s27, %s1874_s8 }
 0x480   : > { %p1479_p7 = scmp.lt.s32.totalorder %s1477_s26, %s1473_s23 }
 0x481   : > { %p1475_p2 = pnand %p1474_p1, %p1672_p5 }
 0x482   : > { %p1480_p6 = por %p1479_p7, %p1478_p4 }
 0x483   : > { %p1476_p3 = pneg %p1475_p2 }
 0x485   : > { %p1481_p8 = pnand %p1480_p6, %p1476_p3 }
 0x487   : > { %1484 = shalt.err (!%p1481_p8)
}
 0x488   : > { %1328 = dma.vmem_to_hbm [thread:$0]  (%p1672_p5), %s1082_s28, 16, %s1079_s27, %s1065_s14   ;;  %v1021_v8 = vpop.xlane.xlu1 %1020  ;;  %v1039_v10 = vpop.permute.xlu0 %1038  ;;  %v1051_v15 = vand.u32 127, %v724_v12 }
 0x489   : > { %v1023_v9 = vmul.f32 0.33333334, %v1021_v8  ;;  %s360_s27 = scalar_lea.vmem [#allocation6], %s1794_s29  ;;  %s1884_s14 = sshll.u32 %s1655_s13, 4 }
 0x48a   : > { %vm1052_vm13 = vcmp.eq.s32.totalorder %v1051_v15, 0  ;;  %vm1055_vm14 = vcmp.eq.s32.totalorder %v1051_v15, 1  ;;  %vm1059_vm15 = vcmp.eq.s32.totalorder %v1051_v15, 2  ;;  %s1094_s28 = sshll.u32 %s360_s27, 4  ;;  %s1092_s22 = scalar_lea.hbm %s1875_s9, %s1884_s14  ;;  %s1095_s28 = int_to_ptr.vmem [resolvable:$true] %s1094_s28 }
 0x48b   : > { %v1041_v11 = vmul.f32 %v1039_v10, %v1023_v9  ;;  %s1069_s23 = scalar_lea.sflag [#allocation7], %s1794_s29  ;;  %s1485_s21 = scalar_lea.vmem %s1095_s28, 16 }
 0x48c   : > { %p1486_p9 = scmp.ne.s32.totalorder %s1095_s28, %s1485_s21  ;;  %s1583_s25 = smov [#allocation6]  }
 0x48d   : > { %s1489_s26 = sshll.u32 %s1583_s25, 4  ;;  %s1490_s26 = int_to_ptr.vmem [resolvable:$false] %s1489_s26 }
 0x48e   : > { %p1487_p10 = pnand %p1486_p9, %p1672_p5  ;;  %p1492_p12 = scmp.lt.s32.totalorder %s1095_s28, %s1490_s26 }
 0x490   : > { %p1488_p11 = pneg %p1487_p10 }
 0x4ea   : > { %v1030_v13 = vpop.permute.xlu0 %1029 }
 0x4eb   : > { %1318 = vpush %v1030_v13 }
 0x4ec   : > { %1320 = vpush %v1041_v11 }
 0x4ee   : > { %v1047_v14 = vpop.permute.xlu0 %1046 }
 0x4ef   : > { %1322 = vpush %v1047_v14 }
 0x51c   : > { %s1319_s0 = spop %1318 }
 0x51d   : > { %v1053_v17 = vstv %s1319_s0  ;;  %s1321_s1 = spop %1320  ;;  %s1491_s0 = scalar_lea.vmem %s1490_s26, 32 }
 0x51e   : > { %v1054_v18 = vsel %vm1052_vm13, %v1053_v17, 0.0  ;;  %v1056_v19 = vstv %s1321_s1  ;;  %p1493_p13 = scmp.lt.s32.totalorder %s1491_s0, %s1485_s21 }
 0x51f   : > { %v1057_v20 = vsel %vm1055_vm14, %v1056_v19, 0.0 }
 0x520   : > { %s1323_s24 = spop %1322  ;;  %v1058_v21 = vadd.f32 %v1057_v20, %v1054_v18  ;;  %p1494_p0 = por %p1493_p13, %p1492_p12 }
 0x521   : > { %v1060_v22 = vstv %s1323_s24 }
 0x522   : > { %v1061_v23 = vsel %vm1059_vm15, %v1060_v22, 0.0  ;;  %p1495_p1 = pnand %p1494_p0, %p1488_p11 }
 0x523   : > { %v1062_v24 = vadd.f32 %v1061_v23, %v1058_v21 }
 0x525   : > { %1063 = vst [vmem:[%s360_s27] sm:$0x1] %v1062_v24 }
 0x526   : > { %1498 = shalt.err (!%p1495_p1)
}
 0x527   : > { %s1499_s13 = scalar_lea.hbm %s1092_s22, 16  ;;  %s1503_s24 = scalar_lea.hbm %s1875_s9, 32 }
 0x528   : > { %p1500_p2 = scmp.ne.s32.totalorder %s1092_s22, %s1499_s13  ;;  %p1504_p7 = scmp.lt.s32.totalorder %s1092_s22, %s1875_s9 }
 0x529   : > { %p1505_p6 = scmp.lt.s32.totalorder %s1503_s24, %s1499_s13 }
 0x52a   : > { %p1501_p3 = pnand %p1500_p2, %p1672_p5 }
 0x52b   : > { %p1506_p8 = por %p1505_p6, %p1504_p7 }
 0x52c   : > { %p1502_p4 = pneg %p1501_p3 }
 0x52e   : > { %p1507_p9 = pnand %p1506_p8, %p1502_p4 }
 0x530   : > { %1510 = shalt.err (!%p1507_p9)
}
 0x531   : > { %1329 = dma.vmem_to_hbm [thread:$0]  (%p1672_p5), %s1095_s28, 16, %s1092_s22, %s1069_s23  }
 0x532 PF: > { %p1345_p10 = scmp.ge.s32.totalorder %s1553_s12, 2  ;;  %s1106_s16 = sand.u32 1, %s1541_s30  }
 0x533   : > { %p1885_p11 = scmp.ne.s32.totalorder %s1880_s20, 0  ;;  %s1107_s17 = scalar_lea.sflag [#allocation4], %s1106_s16 }
 0x535   : > { %p1337_p12 = pnand %p1345_p10, %p1885_p11 }
 0x537   : > { %p1338_p13 = pneg %p1337_p12 }
 0x539   : > { %1532 = dma.done.wait (%p1338_p13), %s1107_s17, 16  }
 0x53a   : > { %1534 = vsyncadd (%p1338_p13), %s1107_s17, 4294967280  ;;  %s1115_s21 = scalar_lea.sflag [#allocation7], %s1106_s16 }
 0x53b   : > { %1536 = dma.done.wait (%p1338_p13), %s1115_s21, 16  }
 0x53c   : > { %1538 = vsyncadd (%p1338_p13), %s1115_s21, 4294967280  ;;  %p24_p5 = scmp.ge.s32.totalorder %s1659_s15, 4   ;;  %s1886_s30 = smov %s1545_s10 }
 0x53d   : > { %s1887_s10 = smov %s1549_s11  ;;  %s1888_s11 = smov %s1670_s18 }
 0x53e   : > { %s1889_s12 = smov %s1659_s15  ;;  %26 = sbr.rel (!%p24_p5) target bundleno = 9 (0x9), region = 114 }
 0x543   :  { %1119 = vsyncpa [#allocation3], 1 }
 0x544   :  { %1121 = vsyncpa [#allocation3 + $0x1], 1 }
 0x545   :  { %1122 = vsyncpa [#allocation4], 1 }
 0x546   :  { %1124 = vsyncpa [#allocation4 + $0x1], 1 }
 0x547   :  { %1125 = vsyncpa [#allocation7], 1 }
 0x548   :  { %1127 = vsyncpa [#allocation7 + $0x1], 1 }

</bundles_post_ra>
